<compile_context>
chip_gen: v5e
topology: v5e:2x2
jax: 0.10.0
libtpu: 0.0.40
codegen_flags: <defaults>
</compile_context>

<pallas_src>
import jax
import jax.numpy as jnp
from jax.experimental import pallas as pl
from jax.experimental.pallas import tpu as pltpu


def psf_sim_loss(psf: jax.Array) -> jax.Array:
    """Pallas equivalent of PSFSimLoss.forward.

    Args:
        psf: array of shape [3, ks, ks].
    Returns:
        scalar float32 loss = mean(|psf[0] - psf[2]|)
    """
    assert psf.ndim == 3 and psf.shape[0] == 3, "expected PSF of shape [3, ks, ks]"
    c, h, w = psf.shape
    n = h * w
    dtype = psf.dtype
    inv_n = float(1.0 / n)                     # compile-time constant multiply
    slab_bytes = c * n * psf.dtype.itemsize    # one copy of the whole PSF

    def kernel(psf_hbm, out_ref, buf, sem):
        # Single contiguous DMA of the whole [3, ks, ks] slab into one
        # single-buffered VMEM scratch (one descriptor, one wait).
        cp = pltpu.make_async_copy(psf_hbm, buf, sem)
        cp.start()
        cp.wait()
        # Sub/abs in native dtype; accumulate the reduction in f32 and scale
        # by the reciprocal of n (constant) instead of dividing.
        diff = jnp.abs(buf[0] - buf[2])
        total = jnp.sum(diff, dtype=jnp.float32) * jnp.float32(inv_n)
        out_ref[...] = jnp.full((1, 1), total, dtype=jnp.float32)

    compiler_kwargs = dict(dimension_semantics=("arbitrary",))
    # Only large PSFs need a raised scoped-VMEM limit (v5e default is 16 MiB).
    if slab_bytes > (12 << 20):
        compiler_kwargs["vmem_limit_bytes"] = int(min(slab_bytes + (4 << 20), 64 << 20))

    out = pl.pallas_call(
        kernel,
        out_shape=jax.ShapeDtypeStruct((1, 1), jnp.float32),
        grid_spec=pltpu.PrefetchScalarGridSpec(
            num_scalar_prefetch=0,
            grid=(1,),
            in_specs=[pl.BlockSpec(memory_space=pl.ANY)],   # no auto-DMA, no double-buffer
            out_specs=pl.BlockSpec((1, 1), lambda i: (0, 0)),
            scratch_shapes=[
                pltpu.VMEM((c, h, w), dtype),                # whole slab, single buffer
                pltpu.SemaphoreType.DMA,
            ],
        ),
        compiler_params=pltpu.CompilerParams(**compiler_kwargs),
        cost_estimate=pl.CostEstimate(
            flops=3 * n,                    # sub + abs + add per element
            transcendentals=0,
            bytes_accessed=slab_bytes + 4,
        ),
    )(psf)
    return out[0, 0]


if __name__ == "__main__":
    k1, k2 = jax.random.split(jax.random.PRNGKey(0))

    # Small PSF, ks*ks a multiple of 128.
    ks = 16
    psf = jax.random.uniform(k1, (3, ks, ks), dtype=jnp.float32)
    loss = psf_sim_loss(psf)
    jax.block_until_ready(loss)
    ref = jnp.mean(jnp.abs(psf[0] - psf[2]))
    assert jnp.allclose(loss, ref, rtol=1e-5, atol=1e-6), (loss, ref)

    # Odd kernel size (ks*ks % 128 != 0) exercises the pad-free path.
    ks2 = 11
    psf2 = jax.random.uniform(k2, (3, ks2, ks2), dtype=jnp.float32)
    loss2 = psf_sim_loss(psf2)
    jax.block_until_ready(loss2)
    ref2 = jnp.mean(jnp.abs(psf2[0] - psf2[2]))
    assert jnp.allclose(loss2, ref2, rtol=1e-5, atol=1e-6), (loss2, ref2)

    print("KERNEL_OK")
</pallas_src>

<mosaic_0001>
module attributes {stable_mosaic.version = 11 : i64} {
  func.func @kernel(%arg0: i32, %arg1: memref<3x16x16xf32, #tpu.memory_space<any>>, %arg2: memref<1x1xf32, #tpu.memory_space<vmem>>, %arg3: memref<3x16x16xf32, #tpu.memory_space<vmem>>, %arg4: memref<!tpu.dma_semaphore, #tpu.memory_space<semaphore_mem>>) attributes {dimension_semantics = [#tpu.dimension_semantics<arbitrary>], iteration_bounds = array<i64: 1>, scalar_prefetch = 0 : i64, scratch_operands = 2 : i64, tpu.core_type = #tpu.core_type<tc>, window_params = [{}, {pipeline_mode = #tpu.pipeline_mode<synchronous>, transform_indices = @transform_1, window_bounds = array<i64: 1, 1>}]} {
    tpu.enqueue_dma source(%arg1 : memref<3x16x16xf32, #tpu.memory_space<any>>) target(%arg3 : memref<3x16x16xf32, #tpu.memory_space<vmem>>) target_semaphore(%arg4 : memref<!tpu.dma_semaphore, #tpu.memory_space<semaphore_mem>>)
    tpu.wait_dma2 semaphore(%arg4 : memref<!tpu.dma_semaphore, #tpu.memory_space<semaphore_mem>>) src(%arg1 : memref<3x16x16xf32, #tpu.memory_space<any>>) dst(%arg3 : memref<3x16x16xf32, #tpu.memory_space<vmem>>)
    %c0 = arith.constant 0 : index
    %c0_0 = arith.constant 0 : index
    %c0_1 = arith.constant 0 : index
    %0 = vector.load %arg3[%c0, %c0_0, %c0_1] : memref<3x16x16xf32, #tpu.memory_space<vmem>>, vector<1x16x16xf32>
    %1 = vector.shape_cast %0 : vector<1x16x16xf32> to vector<16x16xf32>
    %c2 = arith.constant 2 : index
    %c0_2 = arith.constant 0 : index
    %c0_3 = arith.constant 0 : index
    %2 = vector.load %arg3[%c2, %c0_2, %c0_3] : memref<3x16x16xf32, #tpu.memory_space<vmem>>, vector<1x16x16xf32>
    %3 = vector.shape_cast %2 : vector<1x16x16xf32> to vector<16x16xf32>
    %4 = arith.subf %1, %3 : vector<16x16xf32>
    %5 = math.absf %4 : vector<16x16xf32>
    %6 = vector.shape_cast %5 : vector<16x16xf32> to vector<1x16x16xf32>
    %cst = arith.constant dense<0.000000e+00> : vector<1xf32>
    %7 = vector.multi_reduction <add>, %6, %cst [1, 2] : vector<1x16x16xf32> to vector<1xf32>
    %8 = vector.shape_cast %7 : vector<1xf32> to vector<1x1x1xf32>
    %9 = vector.extract %8[0, 0, 0] : f32 from vector<1x1x1xf32>
    %cst_4 = arith.constant 3.906250e-03 : f32
    %10 = arith.mulf %9, %cst_4 : f32
    %11 = vector.broadcast %10 : f32 to vector<1x1xf32>
    %c0_5 = arith.constant 0 : index
    %c0_6 = arith.constant 0 : index
    %12 = vector.load %arg2[%c0_5, %c0_6] : memref<1x1xf32, #tpu.memory_space<vmem>>, vector<1x1xf32>
    tpu.vector_store %arg2[%c0_5, %c0_6], %11 {strides = array<i32>} : memref<1x1xf32, #tpu.memory_space<vmem>>, vector<1x1xf32>,
    return
  }
  func.func @transform_1(%arg0: i32) -> (i32, i32) {
    %c0_i32 = arith.constant 0 : i32
    %c0_i32_0 = arith.constant 0 : i32
    %c0_i32_1 = arith.constant 0 : i32
    return %c0_i32, %c0_i32_0 : i32, i32
  }
}

</mosaic_0001>

<bundles_post_ra>
// kernel: tpu_custom_call.1
= control target key start
LH: loop header
LB: loop body
LE: loop exit
PB: predicated region body
PF: predicated region fallthrough
CT: control target
= control target key end

     0   :  { %6 = vsyncpa [#allocation5], 0  ;;  %s129_s9 = smov [#allocation2]   ;;  %s147_s0 = inlined_call_operand.hbm [shape: f32[3,16,16], index: 0, kind: input, shape index: {}]   ;;  %s148_s1 = inlined_call_operand.hbm [shape: f32[1,1], index: 1, kind: output, shape index: {}]  }
   0x1   :  { %s14_s8 = sshll.u32 %s147_s0, 4  ;;  %s16_s10 = sshll.u32 %s129_s9, 4  ;;  %s15_s8 = int_to_ptr.hbm [resolvable:$true] %s14_s8  ;;  %s17_s10 = int_to_ptr.vmem [resolvable:$true] %s16_s10 }
   0x2   :  { %19 = dma.hbm_to_vmem [thread:$0]  %s15_s8, 768, %s17_s10, [#allocation3] }
   0x3   :  { %125 = dma.done.wait [#allocation3], 768 }
   0x4   :  { %126 = vsyncadd [#allocation3], 4294966528  ;;  %v24_v0 = vld [vmem:[#allocation2] sm:$0xff]  ;;  %v25_v1 = vld [vmem:[#allocation2 + $0x8] sm:$0xff]  ;;  %vm33_vm0 = vcmask 130048   ;;  %s130_s0 = smov [#allocation4]  }
   0x5   :  { %v27_v2 = vld [vmem:[#allocation2 + $0x20] sm:$0xff]  ;;  %v28_v3 = vld [vmem:[#allocation2 + $0x28] sm:$0xff]  ;;  %s55_s11 = sshll.u32 %s130_s0, 4  ;;  %s57_s14 = sshll.u32 %s148_s1, 4  ;;  %vm48_vm1 = vcmask 0   ;;  %s56_s11 = int_to_ptr.vmem [resolvable:$true] %s55_s11  ;;  %s58_s14 = int_to_ptr.hbm [resolvable:$true] %s57_s14 }
   0x6   :  { %v29_v4 = vsub.f32 %v24_v0, %v27_v2  ;;  %v30_v5 = vsub.f32 %v25_v1, %v28_v3 }
   0x8   :  { %v31_v6 = vand.u32 2147483647, %v29_v4  ;;  %v32_v7 = vand.u32 2147483647, %v30_v5 }
   0xa   :  { %v34_v8 = vsel %vm33_vm0, %v31_v6, 0.0  ;;  %v35_v9 = vsel %vm33_vm0, %v32_v7, 0.0 }
   0xb   :  { %v36_v10 = vadd.f32 %v35_v9, %v34_v8 }
   0xd   :  { %37 = vadd.xlane.f32.xlu0 %v36_v10 }
  0x80   :  { %v38_v11 = vpop.xlane.xlu0 %37 }
  0x81   :  { %v39_v12 = vrot.slane %v38_v11, 4 }
  0x83   :  { %v40_v13 = vadd.f32 %v39_v12, %v38_v11 }
  0x85   :  { %v41_v14 = vrot.slane %v40_v13, 2 }
  0x87   :  { %v42_v15 = vadd.f32 %v41_v14, %v40_v13 }
  0x89   :  { %v43_v16 = vrot.slane %v42_v15, 1 }
  0x8b   :  { %v44_v17 = vadd.f32 %v43_v16, %v42_v15 }
  0x8d   :  { %73 = vpush %v44_v17 }
  0xbe   :  { %s74_s15 = spop %73 }
  0xbf   :  { %s46_s16 = smul.f32 0.00390625, %s74_s15 }
  0xc1   :  { %v47_v18 = vstv %s46_s16 }
  0xc2   :  { %49 = vst.msk [vmem:[#allocation4] sm:$0x1] %vm48_vm1, %v47_v18 }
  0xc3   :  { %60 = dma.vmem_to_hbm [thread:$0]  %s56_s11, 16, %s58_s14, [#allocation5]  }
  0xc4   :  { %127 = dma.done.wait [#allocation5], 16  }
  0xc5   :  { %128 = vsyncadd [#allocation5], 4294967280 }
  0xc6   :  { %65 = vsyncpa [#allocation5], 1 }
  0xc7   :  { %66 = vsyncmov [#allocation3] }
  0xca   :  { %s67_s17 = vpop.sfrf %66 }
  0xcb   :  { %p72_p0 = scmp.ne.s32.totalorder %s67_s17, 0 }
  0xcd   :  { %71 = shalt.err (%p72_p0)  }

</bundles_post_ra>
